<compile_context>
chip_gen: v7x
topology: tpu7x:2x2x1
jax: 0.10.0
libtpu: 0.0.40
codegen_flags: <defaults>
</compile_context>

<pallas_src>
import functools

import jax
import jax.numpy as jnp
from jax.experimental import pallas as pl
from jax.experimental.pallas import tpu as pltpu

LANE = 128  # TPU lane width


def _round_up(x, m):
    return ((x + m - 1) // m) * m


# ----------------------------------------------------------------------------
# Pallas kernels
# ----------------------------------------------------------------------------
def _linear_kernel(x_ref, wt_ref, b_ref, o_ref, *, relu):
    # y = x @ Wt + b ; Wt is already (Din_pad, Dout_pad): no in-kernel transpose.
    # bf16 operands -> MXU with f32 accumulation; bias + ReLU epilogue in f32.
    y = jnp.dot(x_ref[...], wt_ref[...], preferred_element_type=jnp.float32)
    y = y + b_ref[...]
    if relu:
        y = jnp.maximum(y, 0.0)
    o_ref[...] = y.astype(o_ref.dtype)


def pallas_linear(x, w, b, relu=False):
    """x: (..., Din), w: (Dout, Din) [PyTorch nn.Linear], b: (Dout,) -> (..., Dout) f32."""
    orig_shape = x.shape
    din = orig_shape[-1]
    dout = w.shape[0]
    x2 = x.reshape(-1, din)
    n = x2.shape[0]

    # Lane-dense padding of both feature dims; big row tile to fill the MXU M dim.
    din_p = _round_up(din, LANE)
    dout_p = _round_up(dout, LANE)
    tm = 128 if n <= 128 else 256          # 256 keeps v6e/v7x systolic passes full
    n_pad = _round_up(n, tm)

    x_p = jnp.zeros((n_pad, din_p), jnp.bfloat16).at[:n, :din].set(
        x2.astype(jnp.bfloat16))
    wt_p = jnp.zeros((din_p, dout_p), jnp.bfloat16).at[:din, :dout].set(
        w.T.astype(jnp.bfloat16))          # transposed once in XLA, not per tile
    b_p = jnp.zeros((1, dout_p), jnp.float32).at[0, :dout].set(
        b.astype(jnp.float32))

    out = pl.pallas_call(
        functools.partial(_linear_kernel, relu=relu),
        out_shape=jax.ShapeDtypeStruct((n_pad, dout_p), jnp.float32),
        grid_spec=pltpu.PrefetchScalarGridSpec(
            num_scalar_prefetch=0,
            grid=(n_pad // tm,),
            in_specs=[
                pl.BlockSpec((tm, din_p), lambda i: (i, 0)),
                pl.BlockSpec((din_p, dout_p), lambda i: (0, 0)),   # weight stays resident
                pl.BlockSpec((1, dout_p), lambda i: (0, 0)),
            ],
            out_specs=pl.BlockSpec((tm, dout_p), lambda i: (i, 0)),
        ),
        compiler_params=pltpu.CompilerParams(dimension_semantics=("parallel",)),
    )(x_p, wt_p, b_p)
    # NOTE: padded rows hold bias(+ReLU) garbage; this slice is load-bearing.
    return out[:n, :dout].reshape(*orig_shape[:-1], dout)


def _biaffine_kernel(dep_ref, head_ref, wt_ref, o_ref, *, n_out, d2p):
    # per batch:  aff[l1, o*d2p + j] = sum_i dep[l1, i] * W[o, j, i]
    #             score[o, l2, l1]   = sum_j head[l2, j] * aff[l1, o*d2p + j]
    # Both contractions go through dot_general (MXU-only, no XLU transposes);
    # the n_out loop is a small static unroll inside a single grid step.
    dep = dep_ref[0]                                            # (Lp, d1p)  bf16
    head = head_ref[0]                                          # (Lp, d2p)  bf16
    aff = jax.lax.dot_general(
        dep, wt_ref[...], (((1,), (0,)), ((), ())),
        preferred_element_type=jnp.float32)                     # (Lp, n_out*d2p) f32
    aff = aff.astype(jnp.bfloat16)
    for o in range(n_out):
        aff_o = aff[:, o * d2p:(o + 1) * d2p]                   # static slice (Lp, d2p)
        s = jax.lax.dot_general(
            head, aff_o, (((1,), (1,)), ((), ())),
            preferred_element_type=jnp.float32)                 # (L_head, L_dep)
        o_ref[0, o] = s.astype(o_ref.dtype)


def pallas_biaffine(dep, head, w, n_out, bias):
    """Parser Biaffine. dep/head: (B, L, d); w = nn.Linear weight
    (n_out*(d2+bias1), d1+bias0).  Returns (B, L_head, L_dep, n_out) f32."""
    b, l, d1 = dep.shape
    d2 = head.shape[-1]
    d1a = d1 + int(bias[0])
    d2a = d2 + int(bias[1])
    d1p = _round_up(d1a, LANE)
    d2p = _round_up(d2a, LANE)
    lp = _round_up(l, LANE)                     # lane-dense (Lp x Lp) output slab

    dep_p = jnp.zeros((b, lp, d1p), jnp.bfloat16).at[:, :l, :d1].set(
        dep.astype(jnp.bfloat16))
    if bias[0]:
        dep_p = dep_p.at[:, :l, d1].set(1.0)    # bias ones-column lives in the padding
    head_p = jnp.zeros((b, lp, d2p), jnp.bfloat16).at[:, :l, :d2].set(
        head.astype(jnp.bfloat16))
    if bias[1]:
        head_p = head_p.at[:, :l, d2].set(1.0)

    w3 = w.reshape(n_out, d2a, d1a)
    w3p = jnp.zeros((n_out, d2p, d1p), jnp.float32).at[:, :d2a, :d1a].set(w3)
    # (d1p, n_out*d2p), pre-transposed once in XLA so the kernel is MXU-only.
    wt = jnp.transpose(w3p, (2, 0, 1)).reshape(d1p, n_out * d2p).astype(jnp.bfloat16)

    out = pl.pallas_call(
        functools.partial(_biaffine_kernel, n_out=n_out, d2p=d2p),
        out_shape=jax.ShapeDtypeStruct((b, n_out, lp, lp), jnp.float32),
        grid_spec=pltpu.PrefetchScalarGridSpec(
            num_scalar_prefetch=0,
            grid=(b,),                          # one grid step per batch (n_out fused)
            in_specs=[
                pl.BlockSpec((1, lp, d1p), lambda bi: (bi, 0, 0)),
                pl.BlockSpec((1, lp, d2p), lambda bi: (bi, 0, 0)),
                pl.BlockSpec((d1p, n_out * d2p), lambda bi: (0, 0)),
            ],
            out_specs=pl.BlockSpec((1, n_out, lp, lp), lambda bi: (bi, 0, 0, 0)),
        ),
        compiler_params=pltpu.CompilerParams(dimension_semantics=("parallel",)),
    )(dep_p, head_p, wt)
    # Slice the valid corner and restore PyTorch's (B, L_head, L_dep, n_out) layout.
    return jnp.transpose(out[:, :, :l, :l], (0, 2, 3, 1))


# ----------------------------------------------------------------------------
# Pure-jnp references mirroring the kernels' bf16 quantization (correctness check)
# ----------------------------------------------------------------------------
def jnp_linear(x, w, b, relu=False):
    y = jnp.dot(x.astype(jnp.bfloat16), w.T.astype(jnp.bfloat16),
                preferred_element_type=jnp.float32) + b
    return jnp.maximum(y, 0.0) if relu else y


def jnp_biaffine(dep, head, w, n_out, bias):
    b, l, _ = dep.shape
    if bias[0]:
        dep = jnp.concatenate([dep, jnp.ones((b, l, 1), dep.dtype)], axis=-1)
    if bias[1]:
        head = jnp.concatenate([head, jnp.ones((b, l, 1), head.dtype)], axis=-1)
    d1a = dep.shape[-1]
    d2a = head.shape[-1]
    w3 = w.reshape(n_out, d2a, d1a)
    aff = jnp.einsum("bld,ond->blon", dep.astype(jnp.bfloat16),
                     w3.astype(jnp.bfloat16),
                     preferred_element_type=jnp.float32)        # (B, L1, out, d2a)
    aff = aff.astype(jnp.bfloat16)
    return jnp.einsum("bmd,blod->bmlo", head.astype(jnp.bfloat16), aff,
                      preferred_element_type=jnp.float32)        # (B, L2, L1, out)


# ----------------------------------------------------------------------------
# Model glue (embeddings, BiLSTM, fusion) — faithful to the PyTorch forward
# ----------------------------------------------------------------------------
def reverse_within_length(x, lens):
    b, l, _ = x.shape
    idx = jnp.arange(l)[None, :]
    rev_idx = jnp.clip(lens[:, None] - 1 - idx, 0, l - 1)
    gathered = jnp.take_along_axis(x, rev_idx[:, :, None], axis=1)
    mask = (idx < lens[:, None])[:, :, None]
    return jnp.where(mask, gathered, 0.0)


def bilstm(x, lens, lp, linear_fn):
    """Bidirectional LSTM (pack_padded semantics), output dim = 2*H."""
    b, l, _ = x.shape
    h_dim = lp["w_hh_f"].shape[1]
    mask = (jnp.arange(l)[None, :] < lens[:, None])[:, :, None]

    # Both directions' input projections fused into one pallas_call (concat over Dout).
    # Padded timesteps only ever produce outputs that are masked away below.
    w_ih = jnp.concatenate([lp["w_ih_f"], lp["w_ih_b"]], axis=0)
    b_ih = jnp.concatenate([lp["b_f"], lp["b_b"]], axis=0)
    xp = linear_fn(x, w_ih, b_ih)                                # (B, L, 8H)
    xp_f, xp_b = xp[..., :4 * h_dim], xp[..., 4 * h_dim:]
    xp_b = reverse_within_length(xp_b, lens)                     # reverse projected inputs

    def run_dir(xp_dir, w_hh):
        xp_t = jnp.transpose(xp_dir, (1, 0, 2))                  # (L, B, 4H)

        def step(carry, xt):
            h, c = carry
            # TODO(synk): recurrent h @ W_hh stays in lax.scan (sequential dependence,
            # no clean grid-parallel Pallas formulation at this size).
            gates = xt + h @ w_hh.T
            i, f, g, o = jnp.split(gates, 4, axis=-1)
            c = jax.nn.sigmoid(f) * c + jax.nn.sigmoid(i) * jnp.tanh(g)
            h = jax.nn.sigmoid(o) * jnp.tanh(c)
            return (h, c), h

        init = (jnp.zeros((b, h_dim), jnp.float32), jnp.zeros((b, h_dim), jnp.float32))
        _, hs = jax.lax.scan(step, init, xp_t)
        return jnp.transpose(hs, (1, 0, 2))

    out_f = run_dir(xp_f, lp["w_hh_f"])
    out_b = reverse_within_length(run_dir(xp_b, lp["w_hh_b"]), lens)
    out = jnp.concatenate([out_f, out_b], axis=-1)
    return jnp.where(mask, out, 0.0)


def forward_dep(params, cfg, subword_input_ids, word_seq_lens, orig_to_tok_index,
                attention_mask, tag_ids, linear_fn, biaffine_fn):
    """PreBiafAT.forward(Task='dep', is_train=False) -> (S_arc, S_rel)."""
    del attention_mask
    # TODO(synk): TransformersEmbedder (pretrained BERT stack) replaced by a deterministic
    # subword embedding table + orig_to_tok_index gather.
    sub_emb = params["subword_table"][subword_input_ids]                       # (B, S, Dw)
    word_emb = jnp.take_along_axis(sub_emb, orig_to_tok_index[:, :, None], axis=1)
    tags_emb = params["tag_table"][tag_ids]                                    # (B, L, Dp)
    word_rep = jnp.concatenate([word_emb, tags_emb], axis=-1)                  # (B, L, Dw+Dp)
    # (eval: timestep_dropout skipped)

    private_enc_out = bilstm(word_rep, word_seq_lens, params["dep_lstm"], linear_fn)

    shared_embed = linear_fn(word_rep, params["dep_proj_w"], params["dep_proj_b"])
    # TODO(synk): F.dropout (p=0.5, default training=True -> stochastic) treated as identity
    # for deterministic evaluation.
    shared_enc_out = bilstm(shared_embed, word_seq_lens, params["shared_lstm"], linear_fn)

    # FusionModule(fusion_type='concat'): concat private & shared encodings.
    concat_enc_out = jnp.concatenate([private_enc_out, shared_enc_out], axis=-1)

    # mlp_arc + mlp_rel fused into a single matmul (concat along Dout), then split.
    arc_dim2 = params["mlp_arc_w"].shape[0]
    mlp_w = jnp.concatenate([params["mlp_arc_w"], params["mlp_rel_w"]], axis=0)
    mlp_b = jnp.concatenate([params["mlp_arc_b"], params["mlp_rel_b"]], axis=0)
    feat = linear_fn(concat_enc_out, mlp_w, mlp_b, relu=True)
    arc_feat, rel_feat = feat[..., :arc_dim2], feat[..., arc_dim2:]

    da = arc_feat.shape[-1] // 2
    dr = rel_feat.shape[-1] // 2
    arc_head, arc_dep = arc_feat[..., :da], arc_feat[..., da:]
    rel_head, rel_dep = rel_feat[..., :dr], rel_feat[..., dr:]

    s_arc = biaffine_fn(arc_dep, arc_head, params["arc_W"], 1, (True, False))[..., 0]
    s_rel = biaffine_fn(rel_dep, rel_head, params["rel_W"], cfg["rel_size"], (True, True))
    return s_arc, s_rel


# ----------------------------------------------------------------------------
# Deterministic parameter init
# ----------------------------------------------------------------------------
def init_params(key, cfg):
    keys = iter(jax.random.split(key, 32))

    def nrm(shape, scale=0.1):
        return scale * jax.random.normal(next(keys), shape, dtype=jnp.float32)

    def lstm(din, h):
        return dict(
            w_ih_f=nrm((4 * h, din)), w_hh_f=nrm((4 * h, h)), b_f=nrm((4 * h,)),
            w_ih_b=nrm((4 * h, din)), w_hh_b=nrm((4 * h, h)), b_b=nrm((4 * h,)),
        )

    dw, dp = cfg["word_dim"], cfg["pos_embed_dim"]
    enc, h = cfg["enc_dim"], cfg["enc_dim"] // 2
    tag_table = nrm((cfg["deppos_size"], dp))
    tag_table = tag_table.at[0].set(0.0)  # padding_idx=0
    return dict(
        subword_table=nrm((cfg["subword_vocab"], dw)),
        tag_table=tag_table,
        dep_lstm=lstm(dw + dp, h),
        dep_proj_w=nrm((cfg["shared_input_dim"], dw + dp)),
        dep_proj_b=nrm((cfg["shared_input_dim"],)),
        shared_lstm=lstm(cfg["shared_input_dim"], h),
        mlp_arc_w=nrm((cfg["mlp_arc_dim"] * 2, enc * 2)),
        mlp_arc_b=nrm((cfg["mlp_arc_dim"] * 2,)),
        mlp_rel_w=nrm((cfg["mlp_rel_dim"] * 2, enc * 2)),
        mlp_rel_b=nrm((cfg["mlp_rel_dim"] * 2,)),
        # arc_biaffine: bias=(True, False) -> W: (1*mlp_arc_dim, mlp_arc_dim+1)
        arc_W=nrm((cfg["mlp_arc_dim"], cfg["mlp_arc_dim"] + 1)),
        # rel_biaffine: bias=(True, True) -> W: (rel_size*(mlp_rel_dim+1), mlp_rel_dim+1)
        rel_W=nrm((cfg["rel_size"] * (cfg["mlp_rel_dim"] + 1), cfg["mlp_rel_dim"] + 1)),
    )


# ----------------------------------------------------------------------------
if __name__ == "__main__":
    cfg = dict(subword_vocab=50, word_dim=32, deppos_size=10, pos_embed_dim=8,
               enc_dim=32, shared_input_dim=32, mlp_arc_dim=32, mlp_rel_dim=24,
               rel_size=5)
    B, L, S = 2, 8, 12

    key = jax.random.PRNGKey(0)
    kp, k1, k2, k3 = jax.random.split(key, 4)
    params = init_params(kp, cfg)

    subword_input_ids = jax.random.randint(k1, (B, S), 1, cfg["subword_vocab"])
    orig_to_tok_index = jax.random.randint(k2, (B, L), 0, S)
    attention_mask = jnp.ones((B, S), dtype=jnp.int32)
    tag_ids = jax.random.randint(k3, (B, L), 0, cfg["deppos_size"])
    word_seq_lens = jnp.array([8, 5], dtype=jnp.int32)

    s_arc, s_rel = forward_dep(params, cfg, subword_input_ids, word_seq_lens,
                               orig_to_tok_index, attention_mask, tag_ids,
                               pallas_linear, pallas_biaffine)
    jax.block_until_ready((s_arc, s_rel))

    s_arc_ref, s_rel_ref = forward_dep(params, cfg, subword_input_ids, word_seq_lens,
                                       orig_to_tok_index, attention_mask, tag_ids,
                                       jnp_linear, jnp_biaffine)
    assert s_arc.shape == (B, L, L) and s_rel.shape == (B, L, L, cfg["rel_size"])
    # Pallas and XLA paths use identical bf16-quantized MXU operands; only f32
    # accumulation order differs, so a modest tolerance suffices.
    assert jnp.allclose(s_arc, s_arc_ref, atol=1e-2, rtol=1e-2)
    assert jnp.allclose(s_rel, s_rel_ref, atol=1e-2, rtol=1e-2)
    print("KERNEL_OK")
</pallas_src>

<mosaic_0001>
module attributes {stable_mosaic.version = 11 : i64} {
  func.func @_linear_kernel(%arg0: i32, %arg1: memref<128x128xbf16, #tpu.memory_space<vmem>>, %arg2: memref<128x128xbf16, #tpu.memory_space<vmem>>, %arg3: memref<1x128xf32, #tpu.memory_space<vmem>>, %arg4: memref<128x128xf32, #tpu.memory_space<vmem>>) attributes {dimension_semantics = [#tpu.dimension_semantics<parallel>], iteration_bounds = array<i64: 1>, scalar_prefetch = 0 : i64, scratch_operands = 0 : i64, tpu.core_type = #tpu.core_type<tc>, window_params = [{transform_indices = @transform_0, window_bounds = array<i64: 128, 128>}, {pipeline_mode = #tpu.pipeline_mode<synchronous>, transform_indices = @transform_1, window_bounds = array<i64: 128, 128>}, {pipeline_mode = #tpu.pipeline_mode<synchronous>, transform_indices = @transform_2, window_bounds = array<i64: 1, 128>}, {transform_indices = @transform_3, window_bounds = array<i64: 128, 128>}]} {
    %c0 = arith.constant 0 : index
    %c0_0 = arith.constant 0 : index
    %0 = vector.load %arg1[%c0, %c0_0] : memref<128x128xbf16, #tpu.memory_space<vmem>>, vector<128x128xbf16>
    %c0_1 = arith.constant 0 : index
    %c0_2 = arith.constant 0 : index
    %1 = vector.load %arg2[%c0_1, %c0_2] : memref<128x128xbf16, #tpu.memory_space<vmem>>, vector<128x128xbf16>
    %cst = arith.constant dense<0.000000e+00> : vector<128x128xf32>
    %2 = tpu.matmul %0, %1, %cst {dimension_numbers = #tpu.dot_dimension_numbers<[1], [0], [0], [1], [0, 0, 1, 1], [], []>} : vector<128x128xbf16>, vector<128x128xbf16>, vector<128x128xf32> -> vector<128x128xf32>
    %c0_3 = arith.constant 0 : index
    %c0_4 = arith.constant 0 : index
    %3 = vector.load %arg3[%c0_3, %c0_4] : memref<1x128xf32, #tpu.memory_space<vmem>>, vector<1x128xf32>
    %4 = vector.broadcast %3 : vector<1x128xf32> to vector<128x128xf32>
    %5 = arith.addf %2, %4 : vector<128x128xf32>
    %c0_5 = arith.constant 0 : index
    %c0_6 = arith.constant 0 : index
    %6 = vector.load %arg4[%c0_5, %c0_6] : memref<128x128xf32, #tpu.memory_space<vmem>>, vector<128x128xf32>
    tpu.vector_store %arg4[%c0_5, %c0_6], %5 {strides = array<i32>} : memref<128x128xf32, #tpu.memory_space<vmem>>, vector<128x128xf32>,
    return
  }
  func.func @transform_0(%arg0: i32) -> (i32, i32) {
    %c0_i32 = arith.constant 0 : i32
    %c0_i32_0 = arith.constant 0 : i32
    return %arg0, %c0_i32 : i32, i32
  }
  func.func @transform_1(%arg0: i32) -> (i32, i32) {
    %c0_i32 = arith.constant 0 : i32
    %c0_i32_0 = arith.constant 0 : i32
    %c0_i32_1 = arith.constant 0 : i32
    return %c0_i32, %c0_i32_0 : i32, i32
  }
  func.func @transform_2(%arg0: i32) -> (i32, i32) {
    %c0_i32 = arith.constant 0 : i32
    %c0_i32_0 = arith.constant 0 : i32
    %c0_i32_1 = arith.constant 0 : i32
    return %c0_i32, %c0_i32_0 : i32, i32
  }
  func.func @transform_3(%arg0: i32) -> (i32, i32) {
    %c0_i32 = arith.constant 0 : i32
    %c0_i32_0 = arith.constant 0 : i32
    return %arg0, %c0_i32 : i32, i32
  }
}

</mosaic_0001>

<bundles_post_ra>
// kernel: tpu_custom_call.1
= control target key start
LH: loop header
LB: loop body
LE: loop exit
PB: predicated region body
PF: predicated region fallthrough
CT: control target
= control target key end

     0   :  { %8 = vsyncpa [#allocation3], 0  ;;  %s552_s0 = inlined_call_operand.hbm [shape: bf16[128,128], index: 0, kind: input, shape index: {}]   ;;  %s553_s1 = inlined_call_operand.hbm [shape: bf16[128,128], index: 1, kind: input, shape index: {}]   ;;  %s554_s2 = inlined_call_operand.vmem [shape: f32[1,128], index: 2, kind: input, shape index: {}]   ;;  %s555_s3 = inlined_call_operand.hbm [shape: f32[128,128], index: 3, kind: output, shape index: {}]  }
   0x1   :  { %9 = vsyncpa [#allocation6], 0 }
   0x2   :  { %10 = vsyncpa [#allocation4], 0  ;;  %s486_s12 = smov [#allocation2]   ;;  %s414_s16 = scalar_lea.hbm %s552_s0, 1024 }
   0x3   :  { %s16_s13 = sshll.u32 %s486_s12, 4  ;;  %p415_p0 = scmp.ne.s32.totalorder %s552_s0, %s414_s16  ;;  %s17_s13 = int_to_ptr.vmem [resolvable:$true] %s16_s13 }
   0x4   :  { %p418_p1 = scmp.lt.u32.totalorder %s414_s16, %s552_s0 }
   0x6   :  { %p420_p2 = pnand %p418_p1, %p415_p0 }
   0x8   :  { %423 = shalt.err (!%p420_p2)
}
   0x9   :  { %s424_s21 = scalar_lea.vmem %s17_s13, 1024  ;;  %p429_p4 = scmp.lt.s32.totalorder %s17_s13, %s17_s13 }
   0xa   :  { %p425_p3 = scmp.ne.s32.totalorder %s17_s13, %s424_s21  ;;  %p430_p5 = scmp.lt.s32.totalorder %s424_s21, %s424_s21 }
   0xc   :  { %p431_p6 = por %p430_p5, %p429_p4 }
   0xe   :  { %p432_p7 = pnand %p431_p6, %p425_p3 }
  0x10   :  { %435 = shalt.err (!%p432_p7)
}
  0x11   :  { %s487_s22 = smov 64   ;;  %s488_s23 = smov 4  }
  0x12   :  { %22 = dma.hbm_to_vmem [thread:$0]  %s552_s0, 1024, %s17_s13, [#allocation3], %s487_s22, %s487_s22, %s488_s23  }
  0x13   :  { %s489_s26 = smov [#allocation5]   ;;  %s436_s30 = scalar_lea.hbm %s553_s1, 1024 }
  0x14   :  { %s28_s27 = sshll.u32 %s489_s26, 4  ;;  %p437_p8 = scmp.ne.s32.totalorder %s553_s1, %s436_s30  ;;  %s29_s27 = int_to_ptr.vmem [resolvable:$true] %s28_s27 }
  0x15   :  { %p440_p9 = scmp.lt.u32.totalorder %s436_s30, %s553_s1 }
  0x17   :  { %p442_p10 = pnand %p440_p9, %p437_p8 }
  0x19   :  { %445 = shalt.err (!%p442_p10)
}
  0x1a   :  { %s446_s8 = scalar_lea.vmem %s29_s27, 1024  ;;  %p451_p12 = scmp.lt.s32.totalorder %s29_s27, %s29_s27 }
  0x1b   :  { %p447_p11 = scmp.ne.s32.totalorder %s29_s27, %s446_s8  ;;  %p452_p13 = scmp.lt.s32.totalorder %s446_s8, %s446_s8 }
  0x1d   :  { %p453_p0 = por %p452_p13, %p451_p12 }
  0x1f   :  { %p454_p1 = pnand %p453_p0, %p447_p11 }
  0x21   :  { %457 = shalt.err (!%p454_p1)
}
  0x22   :  { %34 = dma.hbm_to_vmem [thread:$0]  %s553_s1, 1024, %s29_s27, [#allocation6], %s487_s22, %s487_s22, %s488_s23  }
  0x23   :  { %480 = dma.done.wait [#allocation3], 1024  }
  0x24   :  { %481 = vsyncadd [#allocation3], 4294966272 }
  0x25   :  { %482 = dma.done.wait [#allocation6], 1024  }
  0x26   :  { %483 = vsyncadd [#allocation6], 4294966272  ;;  %v398_v0 = vld [vmem:[#allocation5] sm:$0xff]   ;;  %v399_v1 = vld [vmem:[#allocation5 + $0x8] sm:$0xff]  }
  0x27   :  { %343 = vmatprep.subr.bf16.mxu0 %v398_v0  ;;  %375 = vmatprep.subr.bf16.mxu1 %v398_v0  ;;  %v400_v2 = vld [vmem:[#allocation5 + $0x10] sm:$0xff]   ;;  %v401_v3 = vld [vmem:[#allocation5 + $0x18] sm:$0xff]   ;;  %v406_v4 = vld [vmem:[#allocation2] sm:$0xff]  }
  0x28   :  { %344 = vmatpush3.bf16.msra.mxu0 %v398_v0  ;;  %383 = vmatpush3.bf16.msra.mxu1 %v398_v0  ;;  %v407_v5 = vld [vmem:[#allocation2 + $0x20] sm:$0xff]   ;;  %v403_v7 = vld [vmem:[#allocation5 + $0x28] sm:$0xff]   ;;  %v404_v8 = vld [vmem:[#allocation5 + $0x30] sm:$0xff]  }
  0x29   :  { %345 = vmatprep.subr.bf16.mxu0 %v399_v1  ;;  %376 = vmatprep.subr.bf16.mxu1 %v399_v1  ;;  %v402_v6 = vld [vmem:[#allocation5 + $0x20] sm:$0xff]   ;;  %v405_v9 = vld [vmem:[#allocation5 + $0x38] sm:$0xff]   ;;  %v408_v10 = vld [vmem:[#allocation2 + $0x8] sm:$0xff]  }
  0x2a   :  { %359 = vmatprep.mubr.bf16.mxu0 %v406_v4  ;;  %367 = vmatprep.mubr.bf16.mxu1 %v407_v5  ;;  %v409_v11 = vld [vmem:[#allocation2 + $0x28] sm:$0xff]   ;;  %v410_v12 = vld [vmem:[#allocation2 + $0x10] sm:$0xff]   ;;  %v412_v14 = vld [vmem:[#allocation2 + $0x18] sm:$0xff]  }
  0x2b   :  { %v411_v13 = vld [vmem:[#allocation2 + $0x30] sm:$0xff]   ;;  %v413_v15 = vld [vmem:[#allocation2 + $0x38] sm:$0xff]   ;;  %v310_v16 = vld [vmem:[%s554_s2] ss:$0 sm:$0xff]  ;;  %s490_s2 = smov [#allocation7]  }
  0x2c   :  { %346 = vmatpush3.bf16.msra.mxu0 %v399_v1  ;;  %384 = vmatpush3.bf16.msra.mxu1 %v399_v1  ;;  %s297_s11 = sshll.u32 %s490_s2, 4  ;;  %s298_s11 = int_to_ptr.vmem [resolvable:$true] %s297_s11 }
  0x2d   :  { %347 = vmatprep.subr.bf16.mxu0 %v400_v2  ;;  %377 = vmatprep.subr.bf16.mxu1 %v400_v2  ;;  %s458_s12 = scalar_lea.vmem %s298_s11, 2048  ;;  %p463_p3 = scmp.lt.s32.totalorder %s298_s11, %s298_s11 }
  0x2e   :  { %p459_p2 = scmp.ne.s32.totalorder %s298_s11, %s458_s12  ;;  %p464_p4 = scmp.lt.s32.totalorder %s458_s12, %s458_s12 }
  0x30   :  { %348 = vmatpush3.bf16.msra.mxu0 %v400_v2  ;;  %385 = vmatpush3.bf16.msra.mxu1 %v400_v2  ;;  %p465_p5 = por %p464_p4, %p463_p3 }
  0x31   :  { %349 = vmatprep.subr.bf16.mxu0 %v401_v3  ;;  %378 = vmatprep.subr.bf16.mxu1 %v401_v3 }
  0x32   :  { %p466_p6 = pnand %p465_p5, %p459_p2 }
  0x34   :  { %350 = vmatpush3.bf16.msra.mxu0 %v401_v3  ;;  %386 = vmatpush3.bf16.msra.mxu1 %v401_v3 }
  0x35   :  { %351 = vmatprep.subr.bf16.mxu0 %v402_v6  ;;  %379 = vmatprep.subr.bf16.mxu1 %v402_v6 }
  0x38   :  { %352 = vmatpush3.bf16.msra.mxu0 %v402_v6  ;;  %387 = vmatpush3.bf16.msra.mxu1 %v402_v6 }
  0x39   :  { %353 = vmatprep.subr.bf16.mxu0 %v403_v7  ;;  %380 = vmatprep.subr.bf16.mxu1 %v403_v7 }
  0x3c   :  { %354 = vmatpush3.bf16.msra.mxu0 %v403_v7  ;;  %388 = vmatpush3.bf16.msra.mxu1 %v403_v7 }
  0x3d   :  { %355 = vmatprep.subr.bf16.mxu0 %v404_v8  ;;  %381 = vmatprep.subr.bf16.mxu1 %v404_v8 }
  0x40   :  { %356 = vmatpush3.bf16.msra.mxu0 %v404_v8  ;;  %389 = vmatpush3.bf16.msra.mxu1 %v404_v8 }
  0x41   :  { %357 = vmatprep.subr.bf16.mxu0 %v405_v9  ;;  %382 = vmatprep.subr.bf16.mxu1 %v405_v9 }
  0x44   :  { %358 = vmatpush3.bf16.msra.mxu0 %v405_v9  ;;  %390 = vmatpush3.bf16.msra.mxu1 %v405_v9 }
  0x47   :  { %360 = vmatmul.mubr.bf16.vlgmr.msra.gmra.mrb[0].mxu0 %v408_v10  ;;  %368 = vmatmul.mubr.bf16.vlgmr.msra.gmra.mrb[0].mxu1 %v409_v11 }
  0x48   :  { %363 = vmatprep.mubr.bf16.mxu0 %v410_v12  ;;  %371 = vmatprep.mubr.bf16.mxu1 %v411_v13 }
  0x4f   :  { %364 = vmatmul.mubr.bf16.gmra.mrb[4].mxu0 %v412_v14  ;;  %372 = vmatmul.mubr.bf16.gmra.mrb[4].mxu1 %v413_v15 }
 0x11a   :  { %v361_v17 = vpop.f32.mrb[0].mxu0  ;;  %v369_v18 = vpop.f32.mrb[0].mxu1 }
 0x11b   :  { %v222_v19 = vadd.f32 %v361_v17, %v310_v16  ;;  %v254_v20 = vadd.f32 %v369_v18, %v310_v16  ;;  %v213_v21 = vpop.f32.mrb[1].mxu0  ;;  %v245_v22 = vpop.f32.mrb[1].mxu1 }
 0x11c   :  { %v214_v23 = vadd.f32 %v310_v16, %v213_v21  ;;  %v246_v24 = vadd.f32 %v310_v16, %v245_v22  ;;  %v362_v25 = vpop.f32.mrb[2].mxu0  ;;  %v370_v26 = vpop.f32.mrb[2].mxu1 }
 0x11d   :  { %278 = vst [vmem:[#allocation7 + $0x10] sm:$0xff] %v222_v19  ;;  %286 = vst [vmem:[#allocation7 + $0x50] sm:$0xff] %v254_v20  ;;  %v225_v27 = vadd.f32 %v362_v25, %v310_v16  ;;  %v257_v28 = vadd.f32 %v370_v26, %v310_v16  ;;  %v216_v29 = vpop.f32.mrb[3].mxu0  ;;  %v248_v30 = vpop.f32.mrb[3].mxu1 }
 0x11e   :  { %276 = vst [vmem:[#allocation7] sm:$0xff] %v214_v23  ;;  %284 = vst [vmem:[#allocation7 + $0x40] sm:$0xff] %v246_v24  ;;  %v217_v31 = vadd.f32 %v310_v16, %v216_v29  ;;  %v249_v32 = vadd.f32 %v310_v16, %v248_v30 }
 0x11f   :  { %279 = vst [vmem:[#allocation7 + $0x18] sm:$0xff] %v225_v27  ;;  %287 = vst [vmem:[#allocation7 + $0x58] sm:$0xff] %v257_v28 }
 0x120   :  { %277 = vst [vmem:[#allocation7 + $0x8] sm:$0xff] %v217_v31  ;;  %285 = vst [vmem:[#allocation7 + $0x48] sm:$0xff] %v249_v32 }
 0x122   :  { %v365_v33 = vpop.f32.mrb[4].mxu0  ;;  %v373_v34 = vpop.f32.mrb[4].mxu1 }
 0x123   :  { %v238_v35 = vadd.f32 %v365_v33, %v310_v16  ;;  %v270_v36 = vadd.f32 %v373_v34, %v310_v16  ;;  %v229_v37 = vpop.f32.mrb[5].mxu0  ;;  %v261_v38 = vpop.f32.mrb[5].mxu1 }
 0x124   :  { %v230_v39 = vadd.f32 %v310_v16, %v229_v37  ;;  %v262_v40 = vadd.f32 %v310_v16, %v261_v38  ;;  %v366_v41 = vpop.f32.mrb[6].mxu0  ;;  %v374_v42 = vpop.f32.mrb[6].mxu1 }
 0x125   :  { %282 = vst [vmem:[#allocation7 + $0x30] sm:$0xff] %v238_v35  ;;  %290 = vst [vmem:[#allocation7 + $0x70] sm:$0xff] %v270_v36  ;;  %v241_v43 = vadd.f32 %v366_v41, %v310_v16  ;;  %v273_v44 = vadd.f32 %v374_v42, %v310_v16  ;;  %v232_v45 = vpop.f32.mrb[7].mxu0  ;;  %v264_v46 = vpop.f32.mrb[7].mxu1 }
 0x126   :  { %280 = vst [vmem:[#allocation7 + $0x20] sm:$0xff] %v230_v39  ;;  %288 = vst [vmem:[#allocation7 + $0x60] sm:$0xff] %v262_v40  ;;  %v233_v47 = vadd.f32 %v310_v16, %v232_v45  ;;  %v265_v48 = vadd.f32 %v310_v16, %v264_v46 }
 0x127   :  { %283 = vst [vmem:[#allocation7 + $0x38] sm:$0xff] %v241_v43  ;;  %291 = vst [vmem:[#allocation7 + $0x78] sm:$0xff] %v273_v44 }
 0x128   :  { %281 = vst [vmem:[#allocation7 + $0x28] sm:$0xff] %v233_v47  ;;  %289 = vst [vmem:[#allocation7 + $0x68] sm:$0xff] %v265_v48 }
 0x129   :  { %469 = shalt.err (!%p466_p6)
}
 0x12a   :  { %s470_s15 = scalar_lea.hbm %s555_s3, 2048 }
 0x12b   :  { %p471_p7 = scmp.ne.s32.totalorder %s555_s3, %s470_s15  ;;  %p474_p8 = scmp.lt.u32.totalorder %s470_s15, %s555_s3 }
 0x12d   :  { %p476_p9 = pnand %p474_p8, %p471_p7 }
 0x12f   :  { %479 = shalt.err (!%p476_p9)
}
 0x130   :  { %s491_s20 = smov 128   ;;  %s492_s21 = smov 8  }
 0x131   :  { %303 = dma.vmem_to_hbm [thread:$0]  %s298_s11, 2048, %s555_s3, [#allocation4], %s491_s20, %s491_s20, %s492_s21  }
 0x132   :  { %484 = dma.done.wait [#allocation4], 2048  }
 0x133   :  { %485 = vsyncadd [#allocation4], 4294965248 }
 0x134   :  { %307 = vsyncpa [#allocation3], 1 }
 0x135   :  { %308 = vsyncpa [#allocation6], 1 }
 0x136   :  { %309 = vsyncpa [#allocation4], 1 }

</bundles_post_ra>
